<compile_context>
chip_gen: v7x
topology: tpu7x:2x2x1
jax: 0.10.0
libtpu: 0.0.40
codegen_flags: <defaults>
</compile_context>

<pallas_src>
import functools

import jax
import jax.numpy as jnp
from jax.experimental import pallas as pl
from jax.experimental.pallas import tpu as pltpu


_TARGET_BLOCK_BYTES = 4 * 1024 * 1024   # per-input block (x2 inputs x2 buffers)


def _choose_tile_p(P, C, itemsize):
    """Largest 128-multiple divisor of P whose (C, tP) block fits the budget."""
    if C * P * itemsize <= _TARGET_BLOCK_BYTES:
        return P
    budget_tp = max(128, _TARGET_BLOCK_BYTES // (C * itemsize))
    best = None
    tp = 128
    while tp <= min(P - 1, budget_tp):
        if P % tp == 0:
            best = tp
        tp += 128
    # TODO(synk): if P has no suitable 128-multiple divisor we fall back to the
    # whole image per step instead of masking a ragged tail.
    return best if best is not None else P


def _ssd_kernel(fake_ref, real_ref, out_ref, accf_ref, accr_ref, accm_ref):
    """One (image n, P-chunk p) step of sum((real_nchw - fake)^2)."""
    p = pl.program_id(1)

    @pl.when(p == 0)
    def _init():
        accf_ref[...] = jnp.zeros_like(accf_ref)
        accr_ref[...] = jnp.zeros_like(accr_ref)
        accm_ref[...] = jnp.zeros_like(accm_ref)

    f = fake_ref[0].astype(jnp.float32)     # (C, tP)  NCHW-flat chunk
    r = real_ref[0].astype(jnp.float32)     # (tP, C)  NHWC-flat chunk

    # Deferred reductions: per-lane partial sums of squares (sublane reduce on
    # the XLU slot) and the accumulated cross-term matmul (MXU slot).
    accf_ref[...] += jnp.sum(f * f, axis=0, keepdims=True)               # (1, tP)
    accr_ref[...] += jnp.sum(r * r, axis=0, keepdims=True)               # (1, C)
    accm_ref[...] += jnp.dot(f, r, preferred_element_type=jnp.float32)   # (C, C)

    @pl.when(p == pl.num_programs(1) - 1)
    def _finalize():
        c = accm_ref.shape[0]
        row = jax.lax.broadcasted_iota(jnp.int32, (c, c), 0)
        col = jax.lax.broadcasted_iota(jnp.int32, (c, c), 1)
        diag = jnp.where(row == col, accm_ref[...], 0.0)
        # trace(F @ R) = sum_{c,p} fake[n,c,p] * real[n,p,c]  (aligned cross term)
        total = (jnp.sum(accf_ref[...], keepdims=True)
                 + jnp.sum(accr_ref[...], keepdims=True)
                 - 2.0 * jnp.sum(diag, keepdims=True))                   # (1, 1)
        out_ref[0] = total


def my_loss(fake, real, img_shape=None):
    """fake: (N, C, H, W); real: (N, H, W, C). Returns scalar f32 loss."""
    if img_shape is not None:
        assert tuple(fake.shape[1:]) == tuple(img_shape), "images shape may be wrong"
    N, C, H, W = fake.shape
    assert real.shape == (N, H, W, C), (
        "fake images and real images got different shape")

    P = H * W
    # Contiguous (metadata-only) reshapes: no HBM copy, native dtype, no padding.
    fake3 = fake.reshape(N, C, P)
    real3 = real.reshape(N, P, C)

    itemsize = jnp.dtype(fake.dtype).itemsize
    tP = _choose_tile_p(P, C, itemsize)
    grid = (N, P // tP)

    partial = pl.pallas_call(
        _ssd_kernel,
        out_shape=jax.ShapeDtypeStruct((N, 1, 1), jnp.float32),
        grid_spec=pltpu.PrefetchScalarGridSpec(
            num_scalar_prefetch=0,
            grid=grid,
            in_specs=[
                pl.BlockSpec((1, C, tP), lambda n, p: (n, 0, p)),
                pl.BlockSpec((1, tP, C), lambda n, p: (n, p, 0)),
            ],
            out_specs=pl.BlockSpec((1, 1, 1), lambda n, p: (n, 0, 0)),
            scratch_shapes=[
                pltpu.VMEM((1, tP), jnp.float32),   # per-lane sums of fake^2
                pltpu.VMEM((1, C), jnp.float32),    # per-lane sums of real^2
                pltpu.VMEM((C, C), jnp.float32),    # accumulated F @ R
            ],
        ),
        compiler_params=pltpu.CompilerParams(
            dimension_semantics=("parallel", "arbitrary"),
            vmem_limit_bytes=32 * 1024 * 1024,
        ),
    )(fake3, real3)

    return jnp.sum(partial)


if __name__ == "__main__":
    key = jax.random.PRNGKey(0)
    k1, k2 = jax.random.split(key)

    N, C, H, W = 2, 4, 16, 16
    fake = jax.random.normal(k1, (N, C, H, W), dtype=jnp.float32)   # NCHW
    real = jax.random.normal(k2, (N, H, W, C), dtype=jnp.float32)   # NHWC

    loss_fn = jax.jit(functools.partial(my_loss, img_shape=(C, H, W)))
    loss = loss_fn(fake, real)
    jax.block_until_ready(loss)

    # reference check in plain JAX
    ref = jnp.sum((jnp.transpose(real, (0, 3, 1, 2)) - fake) ** 2)
    assert jnp.allclose(loss, ref, rtol=1e-4, atol=1e-2), (loss, ref)

    print("KERNEL_OK")
</pallas_src>

<mosaic_0001>
module attributes {stable_mosaic.version = 11 : i64} {
  func.func @_ssd_kernel(%arg0: i32, %arg1: i32, %arg2: memref<1x4x256xf32, #tpu.memory_space<vmem>>, %arg3: memref<1x256x4xf32, #tpu.memory_space<vmem>>, %arg4: memref<1x1x1xf32, #tpu.memory_space<vmem>>, %arg5: memref<1x256xf32, #tpu.memory_space<vmem>>, %arg6: memref<1x4xf32, #tpu.memory_space<vmem>>, %arg7: memref<4x4xf32, #tpu.memory_space<vmem>>) attributes {dimension_semantics = [#tpu.dimension_semantics<parallel>, #tpu.dimension_semantics<arbitrary>], iteration_bounds = array<i64: 2, 1>, scalar_prefetch = 0 : i64, scratch_operands = 3 : i64, tpu.core_type = #tpu.core_type<tc>, window_params = [{transform_indices = @transform_0, window_bounds = array<i64: 1, 4, 256>}, {transform_indices = @transform_1, window_bounds = array<i64: 1, 256, 4>}, {transform_indices = @transform_2, window_bounds = array<i64: 1, 1, 1>}]} {
    %c0_i32 = arith.constant 0 : i32
    %0 = arith.cmpi eq, %arg1, %c0_i32 : i32
    %1 = arith.extui %0 : i1 to i32
    %c0_i32_0 = arith.constant 0 : i32
    %2 = arith.cmpi ne, %1, %c0_i32_0 : i32
    scf.if %2 {
      %cst_22 = arith.constant 0.000000e+00 : f32
      %26 = vector.broadcast %cst_22 : f32 to vector<1x256xf32>
      %c0_23 = arith.constant 0 : index
      %c0_24 = arith.constant 0 : index
      %27 = vector.load %arg5[%c0_23, %c0_24] : memref<1x256xf32, #tpu.memory_space<vmem>>, vector<1x256xf32>
      tpu.vector_store %arg5[%c0_23, %c0_24], %26 {strides = array<i32>} : memref<1x256xf32, #tpu.memory_space<vmem>>, vector<1x256xf32>,
      %cst_25 = arith.constant 0.000000e+00 : f32
      %28 = vector.broadcast %cst_25 : f32 to vector<1x4xf32>
      %c0_26 = arith.constant 0 : index
      %c0_27 = arith.constant 0 : index
      %29 = vector.load %arg6[%c0_26, %c0_27] : memref<1x4xf32, #tpu.memory_space<vmem>>, vector<1x4xf32>
      tpu.vector_store %arg6[%c0_26, %c0_27], %28 {strides = array<i32>} : memref<1x4xf32, #tpu.memory_space<vmem>>, vector<1x4xf32>,
      %cst_28 = arith.constant 0.000000e+00 : f32
      %30 = vector.broadcast %cst_28 : f32 to vector<4x4xf32>
      %c0_29 = arith.constant 0 : index
      %c0_30 = arith.constant 0 : index
      %31 = vector.load %arg7[%c0_29, %c0_30] : memref<4x4xf32, #tpu.memory_space<vmem>>, vector<4x4xf32>
      tpu.vector_store %arg7[%c0_29, %c0_30], %30 {strides = array<i32>} : memref<4x4xf32, #tpu.memory_space<vmem>>, vector<4x4xf32>,
    } else {
    }
    %c0 = arith.constant 0 : index
    %c0_1 = arith.constant 0 : index
    %c0_2 = arith.constant 0 : index
    %3 = vector.load %arg2[%c0, %c0_1, %c0_2] : memref<1x4x256xf32, #tpu.memory_space<vmem>>, vector<1x4x256xf32>
    %4 = vector.shape_cast %3 : vector<1x4x256xf32> to vector<4x256xf32>
    %c0_3 = arith.constant 0 : index
    %c0_4 = arith.constant 0 : index
    %c0_5 = arith.constant 0 : index
    %5 = vector.load %arg3[%c0_3, %c0_4, %c0_5] : memref<1x256x4xf32, #tpu.memory_space<vmem>>, vector<1x256x4xf32>
    %6 = vector.shape_cast %5 : vector<1x256x4xf32> to vector<256x4xf32>
    %c0_6 = arith.constant 0 : index
    %c0_7 = arith.constant 0 : index
    %7 = vector.load %arg5[%c0_6, %c0_7] : memref<1x256xf32, #tpu.memory_space<vmem>>, vector<1x256xf32>
    %8 = arith.mulf %4, %4 : vector<4x256xf32>
    %cst = arith.constant dense<0.000000e+00> : vector<256xf32>
    %9 = vector.multi_reduction <add>, %8, %cst [0] : vector<4x256xf32> to vector<256xf32>
    %10 = vector.shape_cast %9 : vector<256xf32> to vector<1x256xf32>
    %11 = arith.addf %7, %10 : vector<1x256xf32>
    %c0_8 = arith.constant 0 : index
    %c0_9 = arith.constant 0 : index
    %12 = vector.load %arg5[%c0_8, %c0_9] : memref<1x256xf32, #tpu.memory_space<vmem>>, vector<1x256xf32>
    tpu.vector_store %arg5[%c0_8, %c0_9], %11 {strides = array<i32>} : memref<1x256xf32, #tpu.memory_space<vmem>>, vector<1x256xf32>,
    %c0_10 = arith.constant 0 : index
    %c0_11 = arith.constant 0 : index
    %13 = vector.load %arg6[%c0_10, %c0_11] : memref<1x4xf32, #tpu.memory_space<vmem>>, vector<1x4xf32>
    %14 = arith.mulf %6, %6 : vector<256x4xf32>
    %cst_12 = arith.constant dense<0.000000e+00> : vector<4xf32>
    %15 = vector.multi_reduction <add>, %14, %cst_12 [0] : vector<256x4xf32> to vector<4xf32>
    %16 = vector.shape_cast %15 : vector<4xf32> to vector<1x4xf32>
    %17 = arith.addf %13, %16 : vector<1x4xf32>
    %c0_13 = arith.constant 0 : index
    %c0_14 = arith.constant 0 : index
    %18 = vector.load %arg6[%c0_13, %c0_14] : memref<1x4xf32, #tpu.memory_space<vmem>>, vector<1x4xf32>
    tpu.vector_store %arg6[%c0_13, %c0_14], %17 {strides = array<i32>} : memref<1x4xf32, #tpu.memory_space<vmem>>, vector<1x4xf32>,
    %c0_15 = arith.constant 0 : index
    %c0_16 = arith.constant 0 : index
    %19 = vector.load %arg7[%c0_15, %c0_16] : memref<4x4xf32, #tpu.memory_space<vmem>>, vector<4x4xf32>
    %cst_17 = arith.constant dense<0.000000e+00> : vector<4x4xf32>
    %20 = tpu.matmul %4, %6, %cst_17 {dimension_numbers = #tpu.dot_dimension_numbers<[1], [0], [0], [1], [0, 0, 1, 1], [], []>} : vector<4x256xf32>, vector<256x4xf32>, vector<4x4xf32> -> vector<4x4xf32>
    %21 = arith.addf %19, %20 : vector<4x4xf32>
    %c0_18 = arith.constant 0 : index
    %c0_19 = arith.constant 0 : index
    %22 = vector.load %arg7[%c0_18, %c0_19] : memref<4x4xf32, #tpu.memory_space<vmem>>, vector<4x4xf32>
    tpu.vector_store %arg7[%c0_18, %c0_19], %21 {strides = array<i32>} : memref<4x4xf32, #tpu.memory_space<vmem>>, vector<4x4xf32>,
    %c0_i32_20 = arith.constant 0 : i32
    %23 = arith.cmpi eq, %arg1, %c0_i32_20 : i32
    %24 = arith.extui %23 : i1 to i32
    %c0_i32_21 = arith.constant 0 : i32
    %25 = arith.cmpi ne, %24, %c0_i32_21 : i32
    scf.if %25 {
      %26 = tpu.iota {dimensions = array<i32: 0>} : vector<4x4xi32>
      %27 = tpu.iota {dimensions = array<i32: 1>} : vector<4x4xi32>
      %28 = arith.cmpi eq, %26, %27 : vector<4x4xi32>
      %c0_22 = arith.constant 0 : index
      %c0_23 = arith.constant 0 : index
      %29 = vector.load %arg7[%c0_22, %c0_23] : memref<4x4xf32, #tpu.memory_space<vmem>>, vector<4x4xf32>
      %cst_24 = arith.constant 0.000000e+00 : f32
      %30 = vector.broadcast %cst_24 : f32 to vector<4x4xf32>
      %31 = arith.select %28, %29, %30 : vector<4x4xi1>, vector<4x4xf32>
      %c0_25 = arith.constant 0 : index
      %c0_26 = arith.constant 0 : index
      %32 = vector.load %arg5[%c0_25, %c0_26] : memref<1x256xf32, #tpu.memory_space<vmem>>, vector<1x256xf32>
      %33 = vector.shape_cast %32 : vector<1x256xf32> to vector<1x1x256xf32>
      %cst_27 = arith.constant dense<0.000000e+00> : vector<1xf32>
      %34 = vector.multi_reduction <add>, %33, %cst_27 [1, 2] : vector<1x1x256xf32> to vector<1xf32>
      %35 = vector.shape_cast %34 : vector<1xf32> to vector<1x1x1xf32>
      %36 = vector.extract %35[0, 0, 0] : f32 from vector<1x1x1xf32>
      %37 = vector.broadcast %36 : f32 to vector<1x1xf32>
      %c0_28 = arith.constant 0 : index
      %c0_29 = arith.constant 0 : index
      %38 = vector.load %arg6[%c0_28, %c0_29] : memref<1x4xf32, #tpu.memory_space<vmem>>, vector<1x4xf32>
      %39 = vector.shape_cast %38 : vector<1x4xf32> to vector<1x1x4xf32>
      %cst_30 = arith.constant dense<0.000000e+00> : vector<1xf32>
      %40 = vector.multi_reduction <add>, %39, %cst_30 [1, 2] : vector<1x1x4xf32> to vector<1xf32>
      %41 = vector.shape_cast %40 : vector<1xf32> to vector<1x1x1xf32>
      %42 = vector.extract %41[0, 0, 0] : f32 from vector<1x1x1xf32>
      %43 = vector.broadcast %42 : f32 to vector<1x1xf32>
      %44 = arith.addf %37, %43 : vector<1x1xf32>
      %45 = vector.shape_cast %31 : vector<4x4xf32> to vector<1x4x4xf32>
      %cst_31 = arith.constant dense<0.000000e+00> : vector<1xf32>
      %46 = vector.multi_reduction <add>, %45, %cst_31 [1, 2] : vector<1x4x4xf32> to vector<1xf32>
      %47 = vector.shape_cast %46 : vector<1xf32> to vector<1x1x1xf32>
      %48 = vector.extract %47[0, 0, 0] : f32 from vector<1x1x1xf32>
      %49 = vector.broadcast %48 : f32 to vector<1x1xf32>
      %cst_32 = arith.constant 2.000000e+00 : f32
      %50 = vector.broadcast %cst_32 : f32 to vector<1x1xf32>
      %51 = arith.mulf %50, %49 : vector<1x1xf32>
      %52 = arith.subf %44, %51 : vector<1x1xf32>
      %c0_33 = arith.constant 0 : index
      %c0_34 = arith.constant 0 : index
      %c0_35 = arith.constant 0 : index
      %53 = vector.load %arg4[%c0_33, %c0_34, %c0_35] : memref<1x1x1xf32, #tpu.memory_space<vmem>>, vector<1x1x1xf32>
      %54 = vector.shape_cast %53 : vector<1x1x1xf32> to vector<1x1xf32>
      %55 = vector.shape_cast %52 : vector<1x1xf32> to vector<1x1x1xf32>
      tpu.vector_store %arg4[%c0_33, %c0_34, %c0_35], %55 {strides = array<i32>} : memref<1x1x1xf32, #tpu.memory_space<vmem>>, vector<1x1x1xf32>,
    } else {
    }
    return
  }
  func.func @transform_0(%arg0: i32, %arg1: i32) -> (i32, i32, i32) {
    %c0_i32 = arith.constant 0 : i32
    %c0_i32_0 = arith.constant 0 : i32
    return %arg0, %c0_i32, %arg1 : i32, i32, i32
  }
  func.func @transform_1(%arg0: i32, %arg1: i32) -> (i32, i32, i32) {
    %c0_i32 = arith.constant 0 : i32
    %c0_i32_0 = arith.constant 0 : i32
    return %arg0, %arg1, %c0_i32 : i32, i32, i32
  }
  func.func @transform_2(%arg0: i32, %arg1: i32) -> (i32, i32, i32) {
    %c0_i32 = arith.constant 0 : i32
    %c0_i32_0 = arith.constant 0 : i32
    %c0_i32_1 = arith.constant 0 : i32
    return %arg0, %c0_i32, %c0_i32_0 : i32, i32, i32
  }
}

</mosaic_0001>

<bundles_post_ra>
// kernel: my_loss.1
= control target key start
LH: loop header
LB: loop body
LE: loop exit
PB: predicated region body
PF: predicated region fallthrough
CT: control target
= control target key end

     0   :  { %s774_s9 = smov 0   ;;  %s776_s10 = smov 0   ;;  %s972_s0 = inlined_call_operand.vmem [shape: f32[2,4,256], index: 0, kind: input, shape index: {}]   ;;  %s973_s1 = inlined_call_operand.vmem [shape: f32[2,256,4], index: 1, kind: input, shape index: {}]   ;;  %s974_s2 = inlined_call_operand.vmem [shape: f32[2,1,1], index: 2, kind: output, shape index: {}]  }
   0x1   :  { %s778_s11 = smov 0  }
   0x2 LB: > { %s24_s12 = sadd.s32 1, %s751_s10  ;;  %p624_p0 = scmp.ge.s32.totalorder %s755_s11, 1  ;;  %s755_s11 = sphi %s778_s11, %s12_s11   ;;  %s751_s10 = sphi %s776_s10, %s978_s10   ;;  %s747_s9 = sphi %s774_s9, %s977_s9  }
   0x3   : > { %p26_p1 = scmp.ge.s32.totalorder %s24_s12, 2  ;;  %p148_p2 = scmp.lt.s32.totalorder %s755_s11, 3 }
   0x5   : > { %s980_s12 = smov (%p26_p1, %s24_s12), 0  ;;  %p149_p3 = pnand %p624_p0, %p148_p2 }
   0x6   : > { %p182_p4 = scmp.lt.s32.totalorder (!%p149_p3), %s747_s9, 1  ;;  %vm327_vm0 = vcmask (!%p149_p3), 31744   ;;  %vm255_vm1 = vcmask (!%p149_p3), 1043456   ;;  %vm213_vm3 = vcmask (!%p149_p3), 24576   ;;  %vm215_vm4 = vcmask (!%p149_p3), 27648  }
   0x7   : > { %152 = sbr.rel (%p149_p3) target bundleno = 489 (0x1e9), region = 28  ;;  %vm499_vm5 = vcmask (!%p149_p3), 1040384   ;;  %vm539_vm7 = vcmask (!%p149_p3), 0  }
   0xe   : > { %s982_s9 = smov (!%p182_p4, %s747_s9), 1 }
   0xf   : > { %s632_s13 = sshll.u32 %s982_s9, 8  ;;  %s631_s17 = sshll.u32 %s982_s9, 3 }
  0x10   : > { %s798_s16 = scalar_lea.vmem %s973_s1, %s632_s13  ;;  %s189_s20 = scalar_lea.vmem %s972_s0, %s631_s17 }
  0x11   : > { %v801_v0 = vld [vmem:[%s798_s16 + $0x80] sm:$0xff]  ;;  %v804_v1 = vld [vmem:[%s798_s16 + $0x88] sm:$0xff]  ;;  %v220_v6 = vld [vmem:[%s798_s16 + $0x10] sm:$0xff]  ;;  %s203_s26 = scalar_lea.vmem %s974_s2, %s982_s9 }
  0x12   : > { %v218_v2 = vld [vmem:[%s798_s16] sm:$0xff]  ;;  %v668_v3 = vpack.c.bf16 %v804_v1, %v801_v0  ;;  %v219_v4 = vld [vmem:[%s798_s16 + $0x8] sm:$0xff]  ;;  %v221_v9 = vld [vmem:[%s798_s16 + $0x18] sm:$0xff]  ;;  %v297_v10 = vmul.f32 %v220_v6, %v220_v6 }
  0x13   : > { %v295_v5 = vmul.f32 %v218_v2, %v218_v2  ;;  %v296_v7 = vmul.f32 %v219_v4, %v219_v4  ;;  %v670_v8 = vpack.c.bf16 %v219_v4, %v218_v2  ;;  %v298_v11 = vmul.f32 %v221_v9, %v221_v9  ;;  %v222_v12 = vld [vmem:[%s798_s16 + $0x20] sm:$0xff]  ;;  %v223_v16 = vld [vmem:[%s798_s16 + $0x28] sm:$0xff]  ;;  %v819_v21 = vld [vmem:[%s798_s16 + $0x90] sm:$0xff] }
  0x14   : > { %669 = vmatprep.subr.bf16.mxu0 %v668_v3  ;;  %v299_v14 = vmul.f32 %v222_v12, %v222_v12  ;;  %v331_v18 = vsel %vm327_vm0, %v297_v10, 0.0  ;;  %v300_v19 = vmul.f32 %v223_v16, %v223_v16  ;;  %v822_v22 = vld [vmem:[%s798_s16 + $0x98] sm:$0xff]  ;;  %v224_v23 = vld [vmem:[%s798_s16 + $0x30] sm:$0xff]  ;;  %v826_v25 = vld [vmem:[%s798_s16 + $0xa0] sm:$0xff]  ;;  %v674_v34 = vpack.c.bf16 %v221_v9, %v220_v6 }
  0x15   : > { %671 = vmatpush3.bf16.msra.mxu0 %v670_v8  ;;  %v328_v13 = vsel %vm327_vm0, %v295_v5, 0.0  ;;  %v329_v15 = vsel %vm327_vm0, %v296_v7, 0.0  ;;  %v333_v20 = vsel %vm327_vm0, %v298_v11, 0.0  ;;  %v829_v26 = vld [vmem:[%s798_s16 + $0xa8] sm:$0xff]  ;;  %v301_v27 = vmul.f32 %v224_v23, %v224_v23  ;;  %v225_v29 = vld [vmem:[%s798_s16 + $0x38] sm:$0xff]  ;;  %v839_v36 = vld [vmem:[%s798_s16 + $0xb0] sm:$0xff] }
  0x16   : > { %v330_v17 = vadd.f32 %v329_v15, %v328_v13  ;;  %v335_v28 = vsel %vm327_vm0, %v299_v14, 0.0  ;;  %v672_v31 = vpack.c.bf16 %v822_v22, %v819_v21  ;;  %v302_v32 = vmul.f32 %v225_v29, %v225_v29  ;;  %v842_v37 = vld [vmem:[%s798_s16 + $0xb8] sm:$0xff]  ;;  %v226_v38 = vld [vmem:[%s798_s16 + $0x40] sm:$0xff]  ;;  %v227_v43 = vld [vmem:[%s798_s16 + $0x48] sm:$0xff] }
  0x17   : > { %v337_v33 = vsel %vm327_vm0, %v300_v19, 0.0  ;;  %v676_v35 = vpack.c.bf16 %v829_v26, %v826_v25  ;;  %v303_v40 = vmul.f32 %v226_v38, %v226_v38  ;;  %v339_v41 = vsel %vm327_vm0, %v301_v27, 0.0  ;;  %v852_v48 = vld [vmem:[%s798_s16 + $0xc0] sm:$0xff]  ;;  %v855_v49 = vld [vmem:[%s798_s16 + $0xc8] sm:$0xff]  ;;  %v228_v50 = vld [vmem:[%s798_s16 + $0x50] sm:$0xff] }
  0x18   : > { %v332_v24 = vadd.f32 %v331_v18, %v330_v17  ;;  %673 = vmatprep.subr.bf16.mxu0 %v672_v31  ;;  %v678_v42 = vpack.c.bf16 %v223_v16, %v222_v12  ;;  %v680_v45 = vpack.c.bf16 %v842_v37, %v839_v36  ;;  %v304_v46 = vmul.f32 %v227_v43, %v227_v43  ;;  %v229_v55 = vld [vmem:[%s798_s16 + $0x58] sm:$0xff]  ;;  %v867_v60 = vld [vmem:[%s798_s16 + $0xd0] sm:$0xff]  ;;  %v872_v62 = vld [vmem:[%s189_s20] sm:$0xff] }
  0x19   : > { %675 = vmatpush3.bf16.msra.mxu0 %v674_v34  ;;  %v341_v47 = vsel %vm327_vm0, %v302_v32, 0.0  ;;  %v305_v52 = vmul.f32 %v228_v50, %v228_v50  ;;  %v343_v53 = vsel %vm327_vm0, %v303_v40, 0.0  ;;  %v682_v54 = vpack.c.bf16 %v225_v29, %v224_v23  ;;  %v870_v61 = vld [vmem:[%s798_s16 + $0xd8] sm:$0xff]  ;;  %v230_v63 = vld [vmem:[%s798_s16 + $0x60] sm:$0xff]  ;;  %v231_v6 = vld [vmem:[%s798_s16 + $0x68] sm:$0xff] }
  0x1a   : > { %v334_v30 = vadd.f32 %v333_v20, %v332_v24  ;;  %677 = vmatprep.subr.bf16.mxu0 %v676_v35  ;;  %v684_v57 = vpack.c.bf16 %v855_v49, %v852_v48  ;;  %v306_v58 = vmul.f32 %v229_v55, %v229_v55  ;;  %v345_v59 = vsel %vm327_vm0, %v304_v46, 0.0  ;;  %v883_v12 = vld [vmem:[%s798_s16 + $0xe0] sm:$0xff]  ;;  %v886_v13 = vld [vmem:[%s798_s16 + $0xe8] sm:$0xff]  ;;  %v232_v14 = vld [vmem:[%s798_s16 + $0x70] sm:$0xff] }
  0x1b   : > { %v307_v3 = vmul.f32 %v230_v63, %v230_v63  ;;  %v347_v4 = vsel %vm327_vm0, %v305_v52, 0.0  ;;  %v686_v5 = vpack.c.bf16 %v227_v43, %v226_v38  ;;  %v688_v8 = vpack.c.bf16 %v870_v61, %v867_v60  ;;  %v233_v19 = vld [vmem:[%s798_s16 + $0x78] sm:$0xff] }
  0x1c   : > { %v336_v39 = vadd.f32 %v335_v28, %v334_v30  ;;  %v402_v9 = vcombine.high %v872_v62, %v872_v62  ;;  %v308_v10 = vmul.f32 %v231_v6, %v231_v6  ;;  %v349_v11 = vsel %vm327_vm0, %v306_v58, 0.0  ;;  %v248_v28 = vld [vmem:[%s798_s16 + $0xf0] sm:$0xff]  ;;  %v249_v29 = vld [vmem:[%s798_s16 + $0xf8] sm:$0xff] }
  0x1d   : > { %679 = vmatpush3.bf16.msra.mxu0 %v678_v42  ;;  %v309_v16 = vmul.f32 %v232_v14, %v232_v14  ;;  %v351_v17 = vsel %vm327_vm0, %v307_v3, 0.0  ;;  %v690_v18 = vpack.c.bf16 %v229_v55, %v228_v50  ;;  %v692_v23 = vpack.c.bf16 %v886_v13, %v883_v12 }
  0x1e   : > { %v338_v44 = vadd.f32 %v337_v33, %v336_v39  ;;  %681 = vmatprep.subr.bf16.mxu0 %v680_v45  ;;  %468 = vmatprep.mubr.f32.mxu0 %v402_v9  ;;  %v310_v24 = vmul.f32 %v233_v19, %v233_v19  ;;  %v353_v27 = vsel %vm327_vm0, %v308_v10, 0.0  ;;  %v311_v31 = vmul.f32 %v801_v0, %v801_v0 }
  0x1f   : > { %v355_v32 = vsel %vm327_vm0, %v309_v16, 0.0  ;;  %v694_v33 = vpack.c.bf16 %v231_v6, %v230_v63  ;;  %v696_v35 = vpack.c.bf16 %v249_v29, %v248_v28  ;;  %v312_v38 = vmul.f32 %v804_v1, %v804_v1 }
  0x20   : > { %v340_v51 = vadd.f32 %v339_v41, %v338_v44  ;;  %v357_v39 = vsel %vm327_vm0, %v310_v24, 0.0  ;;  %v359_v41 = vsel %vm327_vm0, %v311_v31, 0.0  ;;  %v313_v42 = vmul.f32 %v819_v21, %v819_v21 }
  0x21   : > { %683 = vmatpush3.bf16.msra.mxu0 %v682_v54  ;;  %v698_v0 = vpack.c.bf16 %v233_v19, %v232_v14  ;;  %v361_v44 = vsel %vm327_vm0, %v312_v38, 0.0  ;;  %v314_v45 = vmul.f32 %v822_v22, %v822_v22  ;;  %v316_v21 = vmul.f32 %v829_v26, %v829_v26 }
  0x22   : > { %v342_v56 = vadd.f32 %v341_v47, %v340_v51  ;;  %685 = vmatprep.subr.bf16.mxu0 %v684_v57  ;;  %v363_v1 = vsel %vm327_vm0, %v313_v42, 0.0  ;;  %v315_v47 = vmul.f32 %v826_v25, %v826_v25  ;;  %v317_v22 = vmul.f32 %v839_v36, %v839_v36 }
  0x23   : > { %v365_v51 = vsel %vm327_vm0, %v314_v45, 0.0  ;;  %v369_v55 = vsel %vm327_vm0, %v316_v21, 0.0  ;;  %v318_v25 = vmul.f32 %v842_v37, %v842_v37  ;;  %v319_v26 = vmul.f32 %v852_v48, %v852_v48 }
  0x24   : > { %v344_v2 = vadd.f32 %v343_v53, %v342_v56  ;;  %v367_v53 = vsel %vm327_vm0, %v315_v47, 0.0  ;;  %v371_v57 = vsel %vm327_vm0, %v317_v22, 0.0  ;;  %v320_v63 = vmul.f32 %v855_v49, %v855_v49 }
  0x25   : > { %687 = vmatpush3.bf16.msra.mxu0 %v686_v5  ;;  %v375_v36 = vsel %vm327_vm0, %v319_v26, 0.0  ;;  %v321_v3 = vmul.f32 %v867_v60, %v867_v60  ;;  %v322_v5 = vmul.f32 %v870_v61, %v870_v61  ;;  %v324_v9 = vmul.f32 %v886_v13, %v886_v13 }
  0x26   : > { %v346_v7 = vadd.f32 %v345_v59, %v344_v2  ;;  %689 = vmatprep.subr.bf16.mxu0 %v688_v8  ;;  %v373_v59 = vsel %vm327_vm0, %v318_v25, 0.0  ;;  %v377_v37 = vsel %vm327_vm0, %v320_v63, 0.0  ;;  %v326_v61 = vmul.f32 %v249_v29, %v249_v29 }
  0x27   : > { %v379_v48 = vsel %vm327_vm0, %v321_v3, 0.0  ;;  %v381_v49 = vsel %vm327_vm0, %v322_v5, 0.0 }
  0x28   : > { %v348_v15 = vadd.f32 %v347_v4, %v346_v7  ;;  %v323_v7 = vmul.f32 %v883_v12, %v883_v12  ;;  %v389_v12 = vsel %vm327_vm0, %v326_v61, 0.0 }
  0x29   : > { %691 = vmatpush3.bf16.msra.mxu0 %v690_v18 }
  0x2a   : > { %v350_v20 = vadd.f32 %v349_v11, %v348_v15  ;;  %693 = vmatprep.subr.bf16.mxu0 %v692_v23  ;;  %v383_v60 = vsel %vm327_vm0, %v323_v7, 0.0  ;;  %v325_v11 = vmul.f32 %v248_v28, %v248_v28  ;;  %v385_v15 = vsel %vm327_vm0, %v324_v9, 0.0 }
  0x2b   : > { %v251_v23 = vmul.f32 %v872_v62, %v872_v62 }
  0x2c   : > { %v352_v30 = vadd.f32 %v351_v17, %v350_v20  ;;  %v387_v17 = vsel %vm327_vm0, %v325_v11, 0.0 }
  0x2d   : > { %695 = vmatpush3.bf16.msra.mxu0 %v694_v33  ;;  %v253_v13 = vcombine.high %v251_v23, %v251_v23  ;;  %v256_v24 = vsel %vm255_vm1, %v251_v23, 0.0 }
  0x2e   : > { %v354_v34 = vadd.f32 %v353_v27, %v352_v30  ;;  %697 = vmatprep.subr.bf16.mxu0 %v696_v35  ;;  %v257_v28 = vrot.slane %v256_v24, 4 }
  0x2f   : > { %v263_v27 = vsel %vm255_vm1, %v253_v13, 0.0 }
  0x30   : > { %v356_v40 = vadd.f32 %v355_v32, %v354_v34  ;;  %v264_v30 = vrot.slane %v263_v27, 4  ;;  %v258_v31 = vadd.f32 %v257_v28, %v256_v24 }
  0x31   : > { %699 = vmatpush3.bf16.msra.mxu0 %v698_v0  ;;  %v208_v0 = vlaneseq }
  0x32   : > { %v358_v43 = vadd.f32 %v357_v39, %v356_v40  ;;  %v265_v32 = vadd.f32 %v264_v30, %v263_v27  ;;  %v259_v29 = vrot.slane %v258_v31, 2 }
  0x33   : > { %vm945_vm2 = vcmp.lt.s32.totalorder %v208_v0, 256 }
  0x34   : > { %v360_v46 = vadd.f32 %v359_v41, %v358_v43  ;;  %469 = vmatmul.mubr.f32.vlgmr.msra.gmra.mrb[0].mxu0 %v872_v62  ;;  %v266_v33 = vrot.slane %v265_v32, 2  ;;  %v260_v34 = vadd.f32 %v259_v29, %v258_v31  ;;  %v757_v62 = vmov 1966171168  }
  0x36   : > { %v362_v50 = vadd.f32 %v361_v44, %v360_v46  ;;  %v267_v35 = vadd.f32 %v266_v33, %v265_v32  ;;  %v261_v38 = vrot.slane %v260_v34, 1  ;;  %v274_v44 = vunpack.c.l.s4 %v757_v62 }
  0x38   : > { %v364_v52 = vadd.f32 %v363_v1, %v362_v50  ;;  %v268_v39 = vrot.slane %v267_v35, 1  ;;  %v262_v41 = vadd.f32 %v261_v38, %v260_v34  ;;  %v758_v1 = vmov 0.0  }
  0x39   : > { %212 = vst.msk [vmem:[#allocation2] sm:$0x3] %vm945_vm2, %v758_v1  ;;  %v275_v47 = vunpack.c.0.s8 %v274_v44  ;;  %v277_v50 = vshrl.u32 %v208_v0, 7 }
  0x3a   : > { %v366_v54 = vadd.f32 %v365_v51, %v364_v52  ;;  %v269_v42 = vadd.f32 %v268_v39, %v267_v35  ;;  %214 = vst.msk [vmem:[#allocation3] sm:$0x1] %vm213_vm3, %v758_v1 }
  0x3b   : > { %v278_v21 = vsub.s32 %v275_v47, %v277_v50  ;;  %v491_v26 = vsub.s32 0, %v277_v50  ;;  %216 = vst.msk [vmem:[#allocation4] sm:$0xf] %vm215_vm4, %v758_v1 }
  0x3c   : > { %v368_v56 = vadd.f32 %v367_v53, %v366_v54  ;;  %v272_v46 = vcombine.low %v262_v41, %v269_v42 }
  0x3e   : > { %v370_v58 = vadd.f32 %v369_v55, %v368_v56  ;;  %v279_v52 = vrot.slane %v272_v46, %v278_v21 }
  0x40   : > { %v372_v2 = vadd.f32 %v371_v57, %v370_v58  ;;  %v286_v22 = vrot.slane %v279_v52, %v278_v21  ;;  %v250_v54 = vld [vmem:[#allocation2] sm:$0x3]  ;;  %v495_v58 = vsub.s32 1, %v277_v50 }
  0x41   : > { %v294_v57 = vld [vmem:[#allocation3] sm:$0x1] }
  0x42   : > { %v374_v4 = vadd.f32 %v373_v59, %v372_v2  ;;  %v288_v55 = vadd.f32 %v286_v22, %v250_v54 }
  0x44   : > { %v376_v6 = vadd.f32 %v375_v36, %v374_v4  ;;  %293 = vst.msk [vmem:[#allocation2] sm:$0x3] %vm945_vm2, %v288_v55 }
  0x46   : > { %v378_v8 = vadd.f32 %v377_v37, %v376_v6 }
  0x48   : > { %v380_v10 = vadd.f32 %v379_v48, %v378_v8  ;;  %v483_v48 = vand.u32 127, %v208_v0 }
  0x4a   : > { %v382_v14 = vadd.f32 %v381_v49, %v380_v10  ;;  %vm484_vm6 = vcmp.eq.s32.totalorder %v277_v50, %v483_v48  ;;  %v400_v49 = vld [vmem:[#allocation4] sm:$0xf] }
  0x4b   : > { %v487_v63 = vld [vmem:[#allocation2] sm:$0x3] }
  0x4c   : > { %v384_v16 = vadd.f32 %v383_v60, %v382_v14  ;;  %v492_v2 = vrot.slane %v487_v63, %v491_v26  ;;  %v496_v36 = vrot.slane %v487_v63, %v495_v58 }
  0x4e   : > { %v386_v18 = vadd.f32 %v385_v15, %v384_v16  ;;  %v500_v3 = vsel %vm499_vm5, %v492_v2, 0.0  ;;  %v501_v4 = vsel %vm499_vm5, %v496_v36, 0.0 }
  0x4f   : > { %v502_v37 = vadd.f32 %v501_v4, %v500_v3 }
  0x50   : > { %v388_v19 = vadd.f32 %v387_v17, %v386_v18 }
  0x51   : > { %503 = vadd.xlane.f32.xlu0 %v502_v37 }
  0x52   : > { %v390_v20 = vadd.f32 %v389_v12, %v388_v19 }
  0x54   : > { %v391_v40 = vrot.slane %v390_v20, 4 }
  0x56   : > { %v392_v43 = vadd.f32 %v391_v40, %v390_v20 }
  0x58   : > { %v393_v51 = vrot.slane %v392_v43, 2 }
  0x5a   : > { %v394_v53 = vadd.f32 %v393_v51, %v392_v43 }
  0x5c   : > { %v395_v25 = vrot.slane %v394_v53, 1 }
  0x5e   : > { %v396_v56 = vadd.f32 %v395_v25, %v394_v53 }
  0x60   : > { %v397_v59 = vadd.f32 %v396_v56, %v294_v57 }
  0x62   : > { %399 = vst.msk [vmem:[#allocation3] sm:$0x1] %vm213_vm3, %v397_v59 }
  0x69   : > { %v513_v5 = vld [vmem:[#allocation3] sm:$0x1] }
  0x6a   : > { %v514_v6 = vsel %vm213_vm3, %v513_v5, 0.0 }
  0x6b   : > { %515 = vadd.xlane.f32.xlu0 %v514_v6 }
  0xde   : > { %v504_v15 = vpop.xlane.xlu0 %503 }
  0xdf   : > { %v505_v61 = vrot.slane %v504_v15, 4 }
  0xe1   : > { %v506_v16 = vadd.f32 %v505_v61, %v504_v15 }
  0xe3   : > { %v507_v12 = vrot.slane %v506_v16, 2 }
  0xe5   : > { %v508_v13 = vadd.f32 %v507_v12, %v506_v16 }
  0xe7   : > { %v509_v24 = vrot.slane %v508_v13, 1 }
  0xe9   : > { %v510_v28 = vadd.f32 %v509_v24, %v508_v13 }
  0xeb   : > { %700 = vpush %v510_v28 }
  0xf8   : > { %v516_v17 = vpop.xlane.xlu0 %515 }
  0xf9   : > { %v517_v18 = vrot.slane %v516_v17, 4 }
  0xfb   : > { %v518_v19 = vadd.f32 %v517_v18, %v516_v17 }
  0xfd   : > { %v519_v20 = vrot.slane %v518_v19, 2 }
  0xff   : > { %v520_v23 = vadd.f32 %v519_v20, %v518_v19 }
 0x101   : > { %v521_v27 = vrot.slane %v520_v23, 1 }
 0x103   : > { %v522_v30 = vadd.f32 %v521_v27, %v520_v23 }
 0x105   : > { %702 = vpush %v522_v30 }
 0x107   : > { %v665_v7 = vpop.f32.mrb[0].mxu0 }
 0x108   : > { %v666_v8 = vpop.f32.mrb[1].mxu0 }
 0x109   : > { %v667_v9 = vadd.f32 %v666_v8, %v665_v7 }
 0x10b   : > { %v474_v10 = vadd.f32 %v667_v9, %v400_v49 }
 0x10d   : > { %476 = vst.msk [vmem:[#allocation4] sm:$0xf] %vm215_vm4, %v474_v10 }
 0x114   : > { %v485_v60 = vld [vmem:[#allocation4] sm:$0xf] }
 0x115   : > { %v486_v11 = vsel %vm484_vm6, %v485_v60, 0.0 }
 0x116   : > { %v526_v14 = vsel %vm215_vm4, %v486_v11, 0.0 }
 0x117   : > { %527 = vadd.xlane.f32.xlu1 %v526_v14 }
 0x11c   : > { %s701_s21 = spop %700 }
 0x11d   : > { %v512_v39 = vstv %s701_s21 }
 0x136   : > { %s703_s22 = spop %702 }
 0x137   : > { %v524_v40 = vstv %s703_s22 }
 0x138   : > { %v525_v42 = vadd.f32 %v524_v40, %v512_v39 }
 0x1a4   : > { %v528_v31 = vpop.xlane.xlu1 %527 }
 0x1a5   : > { %v529_v32 = vrot.slane %v528_v31, 4 }
 0x1a7   : > { %v530_v29 = vadd.f32 %v529_v32, %v528_v31 }
 0x1a9   : > { %v531_v33 = vrot.slane %v530_v29, 2 }
 0x1ab   : > { %v532_v34 = vadd.f32 %v531_v33, %v530_v29 }
 0x1ad   : > { %v533_v35 = vrot.slane %v532_v34, 1 }
 0x1af   : > { %v534_v38 = vadd.f32 %v533_v35, %v532_v34 }
 0x1b1   : > { %704 = vpush %v534_v38 }
 0x1e2   : > { %s705_s23 = spop %704 }
 0x1e3   : > { %v536_v41 = vstv %s705_s23 }
 0x1e4   : > { %v537_v0 = vmul.f32 2.0, %v536_v41 }
 0x1e6   : > { %v538_v43 = vsub.f32 %v525_v42, %v537_v0 }
 0x1e8   : > { %540 = vst.msk [vmem:[%s203_s26] sm:$0x1] %vm539_vm7, %v538_v43 }
 0x1e9 PF: > { %s12_s11 = sadd.s32 1, %s755_s11   ;;  %s977_s9 = smov %s751_s10 }
 0x1ea   : > { %p9_p5 = scmp.ge.s32.totalorder %s12_s11, 4   ;;  %s978_s10 = smov %s980_s12 }
 0x1ec   :  { %11 = sbr.rel (!%p9_p5) target bundleno = 2 (0x2), region = 69 }

</bundles_post_ra>
